<compile_context>
chip_gen: v5e
topology: v5e:2x2
jax: 0.10.0
libtpu: 0.0.40
codegen_flags: <defaults>
</compile_context>

<pallas_src>
import jax
import jax.numpy as jnp
from jax import lax
from jax.experimental import pallas as pl
from jax.experimental.pallas import tpu as pltpu


def _downsample_kernel(band_ref, halo_ref, w_ref, b_ref, o_ref, acc_ref):
    # band_ref: (1, 2, S, 3C)  bf16; S = T*OW flattened output pixels of this
    #           row block; rp = row parity; lanes ordered (kw, c):
    #           band[0, rp, t*OW+ow, kw*C+c] = x_pad[n, c, 2*(r*T+t)+rp, 2*ow+kw]
    # halo_ref: (1, 2, OW, 3C) bf16; super-row r*T + T (bottom halo).
    # w_ref:    (3, 3C, Cout)  bf16; w[kh, kw*C+c, co] = weight[co, c, kh, kw]
    # b_ref:    (1, Cout)      f32
    # o_ref:    (1, Cout, S)   output block (NCHW, spatial flattened)
    # acc_ref:  (S, Cout)      f32 scratch accumulator
    S = band_ref.shape[2]
    OW = halo_ref.shape[2]

    # kh = 0 (same super-row, parity 0): also initializes acc with the bias
    # folded in — no zero-fill pass, no separate bias epilogue.
    acc_ref[...] = (
        jnp.dot(band_ref[0, 0], w_ref[0], preferred_element_type=jnp.float32)
        + b_ref[...])

    # kh = 1 (same super-row, parity 1)
    acc_ref[...] += jnp.dot(band_ref[0, 1], w_ref[1],
                            preferred_element_type=jnp.float32)

    # kh = 2 (next super-row, parity 0): band rows [OW, S) feed output rows
    # [0, S-OW); the halo super-row feeds the last OW outputs of this block.
    if S > OW:
        acc_ref[:S - OW, :] += jnp.dot(band_ref[0, 0, OW:, :], w_ref[2],
                                       preferred_element_type=jnp.float32)
    acc_ref[S - OW:, :] += jnp.dot(halo_ref[0, 0], w_ref[2],
                                   preferred_element_type=jnp.float32)

    # Cast before the transpose (halves relayout bytes for bf16 outputs);
    # channels-major store -> output is NCHW already and lane-dense (S lanes).
    o_ref[0] = jnp.transpose(acc_ref[...].astype(o_ref.dtype))


def _round_up(x, m):
    return -(-x // m) * m


def _vmem_capacity_bytes():
    try:
        return int(pltpu.get_tpu_info().vmem_capacity_bytes)
    except Exception:
        return 64 * 1024 * 1024   # conservative (v7x per-TC size)


def _vmem_need_bytes(t, ow, c, c_out, out_itemsize):
    """Layout-aware per-grid-step VMEM footprint: lanes padded to 128, sublanes
    to 8 (f32) / 16 (bf16); streamed blocks double-buffered, weights/bias
    single-buffered."""
    k = 3 * c
    s = t * ow
    lanes_k = _round_up(k, 128)
    lanes_co = _round_up(c_out, 128)
    band = 2 * _round_up(s, 16) * lanes_k * 2            # 2 row parities, bf16
    halo = 2 * _round_up(ow, 16) * lanes_k * 2
    w = 3 * _round_up(k, 16) * lanes_co * 2              # single-buffered
    b = 8 * lanes_co * 4
    out_sub = 8 if out_itemsize >= 4 else 16
    out = _round_up(c_out, out_sub) * _round_up(s, 128) * out_itemsize
    acc = _round_up(s, 8) * lanes_co * 4
    return 2 * band + 2 * halo + w + b + 2 * out + acc


def _pick_row_tile(n, oh, ow, c, c_out, out_itemsize, budget_bytes):
    """Largest divisor T of `oh` whose per-step footprint fits the budget, with
    the flattened output tile T*ow a multiple of 128 lanes (or the full image),
    preferring tiles that leave >= 2 grid steps (v7x has 2 TensorCores)."""
    cands = sorted((t for t in range(1, oh + 1)
                    if oh % t == 0 and (t == oh or (t * ow) % 128 == 0)),
                   reverse=True)
    fitting = [t for t in cands
               if _vmem_need_bytes(t, ow, c, c_out, out_itemsize) <= budget_bytes]
    if not fitting:
        return cands[-1]
    multi_step = [t for t in fitting if n * (oh // t) >= 2]
    return multi_step[0] if multi_step else fitting[0]


def _resident_spec(block_shape, index_map):
    """BlockSpec for blocks with a constant index map: single pipeline buffer
    (double-buffering a ~30 MiB weight block buys nothing and can blow v7x's
    64 MiB/TC VMEM). Falls back to a plain BlockSpec on older JAX."""
    try:
        return pl.BlockSpec(block_shape, index_map, pipeline_mode=pl.Buffered(1))
    except (TypeError, AttributeError):
        return pl.BlockSpec(block_shape, index_map)


def downsample_conv(x_nchw, weight, bias):
    """Strided 3x3 conv (stride=2, padding=1): (N,C,H,W) -> (N,C_out,H//2,W//2)."""
    N, C, H, W = x_nchw.shape
    if H % 2 == 1:
        raise ValueError("downsampling tensor height should be even")
    if W % 2 == 1:
        raise ValueError("downsampling tensor width should be even")
    C_out = weight.shape[0]
    OH, OW = H // 2, W // 2
    K = 3 * C
    out_dtype = x_nchw.dtype
    out_itemsize = jnp.dtype(out_dtype).itemsize

    # ---- XLA prologue (one pass over the input): pad, split rows by parity,
    # unroll the 3 column taps into the contraction dim (lanes = (kw, c)):
    #   xk[n, rp, i*OW + ow, kw*C + c] = x_pad[n, c, 2*i + rp, 2*ow + kw]
    # Every in-kernel matmul LHS is then a contiguous 2-D view — no per-tap
    # slice/reshape relayouts — and K = 3C fills the 256-wide MXU.
    x_pad = jnp.pad(x_nchw, ((0, 0), (0, 0), (1, 1), (1, 1)))
    xr = x_pad.reshape(N, C, OH + 1, 2, W + 2)
    xr = jnp.transpose(xr, (0, 3, 2, 4, 1))                  # (N, 2, OH+1, W+2, C)
    taps = [lax.slice_in_dim(xr, kw, kw + 2 * OW - 1, stride=2, axis=3)
            for kw in range(3)]                              # 3 x (N, 2, OH+1, OW, C)
    xk = jnp.stack(taps, axis=4).reshape(N, 2, (OH + 1) * OW, K)
    xk = xk.astype(jnp.bfloat16)

    # weights (C_out, C_in, 3, 3) -> (3, 3C, C_out); K index = kw*C + c.
    w_g = jnp.transpose(weight, (2, 3, 1, 0)).reshape(3, K, C_out)
    w_g = w_g.astype(jnp.bfloat16)
    b_row = bias.reshape(1, C_out).astype(jnp.float32)

    # ---- tiling: (batch, output-row blocks), both parallel ----
    vmem_cap = _vmem_capacity_bytes()
    T = _pick_row_tile(N, OH, OW, C, C_out, out_itemsize,
                       budget_bytes=int(vmem_cap * 0.75))
    S = T * OW
    grid = (N, OH // T)
    need = _vmem_need_bytes(T, OW, C, C_out, out_itemsize)
    vmem_limit = int(min(max(need * 5 // 4, 32 * 1024 * 1024),
                         vmem_cap - 4 * 1024 * 1024))

    band_spec = pl.BlockSpec((1, 2, S, K), lambda n, r: (n, 0, r, 0))
    halo_spec = pl.BlockSpec((1, 2, OW, K), lambda n, r: (n, 0, (r + 1) * T, 0))
    w_spec = _resident_spec((3, K, C_out), lambda n, r: (0, 0, 0))
    b_spec = _resident_spec((1, C_out), lambda n, r: (0, 0))
    out_spec = pl.BlockSpec((1, C_out, S), lambda n, r: (n, 0, r))

    flops = 2 * N * OH * OW * 9 * C * C_out
    bytes_accessed = int(xk.size * 2 + 3 * K * C_out * 2 + C_out * 4
                         + N * C_out * OH * OW * out_itemsize)

    out_flat = pl.pallas_call(
        _downsample_kernel,
        out_shape=jax.ShapeDtypeStruct((N, C_out, OH * OW), out_dtype),
        grid_spec=pltpu.PrefetchScalarGridSpec(
            num_scalar_prefetch=0,
            grid=grid,
            in_specs=[band_spec, halo_spec, w_spec, b_spec],
            out_specs=out_spec,
            scratch_shapes=[pltpu.VMEM((S, C_out), jnp.float32)],
        ),
        compiler_params=pltpu.CompilerParams(
            dimension_semantics=("parallel", "parallel"),
            vmem_limit_bytes=vmem_limit,
        ),
        cost_estimate=pl.CostEstimate(
            flops=flops, transcendentals=0, bytes_accessed=bytes_accessed),
    )(xk, xk, w_g, b_row)

    # Free reshape: the last dim is already row-major (OH, OW).
    return out_flat.reshape(N, C_out, OH, OW)


if __name__ == "__main__":
    key = jax.random.PRNGKey(0)
    kx, kw_, kb = jax.random.split(key, 3)

    N, C, H, W = 2, 4, 16, 16
    x = jax.random.normal(kx, (N, C, H, W), dtype=jnp.float32)

    # Deterministic Conv2d-style init: U(-1/sqrt(fan_in), 1/sqrt(fan_in))
    fan_in = C * 3 * 3
    bound = 1.0 / (fan_in ** 0.5)
    weight = jax.random.uniform(kw_, (C, C, 3, 3), minval=-bound, maxval=bound,
                                dtype=jnp.float32)
    bias = jax.random.uniform(kb, (C,), minval=-bound, maxval=bound,
                              dtype=jnp.float32)

    out = jax.jit(downsample_conv)(x, weight, bias)
    out = jax.block_until_ready(out)
    assert out.shape == (N, C, H // 2, W // 2), out.shape

    # Pure-JAX f32 reference (same semantics as the PyTorch strided conv).
    ref = lax.conv_general_dilated(
        x, weight, window_strides=(2, 2), padding=((1, 1), (1, 1)),
        dimension_numbers=("NCHW", "OIHW", "NCHW")) + bias.reshape(1, C, 1, 1)
    max_err = float(jnp.max(jnp.abs(out - ref)))
    # bf16 operands + f32 accumulation -> loose-but-meaningful tolerance.
    assert jnp.allclose(out, ref, atol=5e-2, rtol=5e-2), max_err

    print("KERNEL_OK")
</pallas_src>

<mosaic_0001>
module attributes {stable_mosaic.version = 11 : i64} {
  func.func @_downsample_kernel(%arg0: i32, %arg1: i32, %arg2: memref<1x2x64x12xbf16, #tpu.memory_space<vmem>>, %arg3: memref<1x2x8x12xbf16, #tpu.memory_space<vmem>>, %arg4: memref<3x12x4xbf16, #tpu.memory_space<vmem>>, %arg5: memref<1x4xf32, #tpu.memory_space<vmem>>, %arg6: memref<1x4x64xf32, #tpu.memory_space<vmem>>, %arg7: memref<64x4xf32, #tpu.memory_space<vmem>>) attributes {dimension_semantics = [#tpu.dimension_semantics<parallel>, #tpu.dimension_semantics<parallel>], iteration_bounds = array<i64: 2, 1>, scalar_prefetch = 0 : i64, scratch_operands = 1 : i64, tpu.core_type = #tpu.core_type<tc>, window_params = [{transform_indices = @transform_0, window_bounds = array<i64: 1, 2, 64, 12>}, {transform_indices = @transform_1, window_bounds = array<i64: 1, 2, 8, 12>}, {pipeline_mode = #tpu.pipeline_mode<synchronous>, transform_indices = @transform_2, window_bounds = array<i64: 3, 12, 4>}, {pipeline_mode = #tpu.pipeline_mode<synchronous>, transform_indices = @transform_3, window_bounds = array<i64: 1, 4>}, {transform_indices = @transform_4, window_bounds = array<i64: 1, 4, 64>}]} {
    %c0 = arith.constant 0 : index
    %c0_0 = arith.constant 0 : index
    %c0_1 = arith.constant 0 : index
    %c0_2 = arith.constant 0 : index
    %0 = vector.load %arg2[%c0, %c0_0, %c0_1, %c0_2] : memref<1x2x64x12xbf16, #tpu.memory_space<vmem>>, vector<1x1x64x12xbf16>
    %1 = vector.shape_cast %0 : vector<1x1x64x12xbf16> to vector<64x12xbf16>
    %c0_3 = arith.constant 0 : index
    %c0_4 = arith.constant 0 : index
    %c0_5 = arith.constant 0 : index
    %2 = vector.load %arg4[%c0_3, %c0_4, %c0_5] : memref<3x12x4xbf16, #tpu.memory_space<vmem>>, vector<1x12x4xbf16>
    %3 = vector.shape_cast %2 : vector<1x12x4xbf16> to vector<12x4xbf16>
    %cst = arith.constant dense<0.000000e+00> : vector<64x4xf32>
    %4 = tpu.matmul %1, %3, %cst {dimension_numbers = #tpu.dot_dimension_numbers<[1], [0], [0], [1], [0, 0, 1, 1], [], []>} : vector<64x12xbf16>, vector<12x4xbf16>, vector<64x4xf32> -> vector<64x4xf32>
    %c0_6 = arith.constant 0 : index
    %c0_7 = arith.constant 0 : index
    %5 = vector.load %arg5[%c0_6, %c0_7] : memref<1x4xf32, #tpu.memory_space<vmem>>, vector<1x4xf32>
    %6 = vector.broadcast %5 : vector<1x4xf32> to vector<64x4xf32>
    %7 = arith.addf %4, %6 : vector<64x4xf32>
    %c0_8 = arith.constant 0 : index
    %c0_9 = arith.constant 0 : index
    %8 = vector.load %arg7[%c0_8, %c0_9] : memref<64x4xf32, #tpu.memory_space<vmem>>, vector<64x4xf32>
    tpu.vector_store %arg7[%c0_8, %c0_9], %7 {strides = array<i32>} : memref<64x4xf32, #tpu.memory_space<vmem>>, vector<64x4xf32>,
    %c0_10 = arith.constant 0 : index
    %c0_11 = arith.constant 0 : index
    %9 = vector.load %arg7[%c0_10, %c0_11] : memref<64x4xf32, #tpu.memory_space<vmem>>, vector<64x4xf32>
    %c0_12 = arith.constant 0 : index
    %c1 = arith.constant 1 : index
    %c0_13 = arith.constant 0 : index
    %c0_14 = arith.constant 0 : index
    %10 = vector.load %arg2[%c0_12, %c1, %c0_13, %c0_14] : memref<1x2x64x12xbf16, #tpu.memory_space<vmem>>, vector<1x1x64x12xbf16>
    %11 = vector.shape_cast %10 : vector<1x1x64x12xbf16> to vector<64x12xbf16>
    %c1_15 = arith.constant 1 : index
    %c0_16 = arith.constant 0 : index
    %c0_17 = arith.constant 0 : index
    %12 = vector.load %arg4[%c1_15, %c0_16, %c0_17] : memref<3x12x4xbf16, #tpu.memory_space<vmem>>, vector<1x12x4xbf16>
    %13 = vector.shape_cast %12 : vector<1x12x4xbf16> to vector<12x4xbf16>
    %cst_18 = arith.constant dense<0.000000e+00> : vector<64x4xf32>
    %14 = tpu.matmul %11, %13, %cst_18 {dimension_numbers = #tpu.dot_dimension_numbers<[1], [0], [0], [1], [0, 0, 1, 1], [], []>} : vector<64x12xbf16>, vector<12x4xbf16>, vector<64x4xf32> -> vector<64x4xf32>
    %15 = arith.addf %9, %14 : vector<64x4xf32>
    %c0_19 = arith.constant 0 : index
    %c0_20 = arith.constant 0 : index
    %16 = vector.load %arg7[%c0_19, %c0_20] : memref<64x4xf32, #tpu.memory_space<vmem>>, vector<64x4xf32>
    tpu.vector_store %arg7[%c0_19, %c0_20], %15 {strides = array<i32>} : memref<64x4xf32, #tpu.memory_space<vmem>>, vector<64x4xf32>,
    %c0_21 = arith.constant 0 : index
    %c0_22 = arith.constant 0 : index
    %17 = vector.load %arg7[%c0_21, %c0_22] : memref<64x4xf32, #tpu.memory_space<vmem>>, vector<56x4xf32>
    %c0_23 = arith.constant 0 : index
    %c0_24 = arith.constant 0 : index
    %c8 = arith.constant 8 : index
    %c0_25 = arith.constant 0 : index
    %18 = vector.load %arg2[%c0_23, %c0_24, %c8, %c0_25] : memref<1x2x64x12xbf16, #tpu.memory_space<vmem>>, vector<1x1x56x12xbf16>
    %19 = vector.shape_cast %18 : vector<1x1x56x12xbf16> to vector<56x12xbf16>
    %c2 = arith.constant 2 : index
    %c0_26 = arith.constant 0 : index
    %c0_27 = arith.constant 0 : index
    %20 = vector.load %arg4[%c2, %c0_26, %c0_27] : memref<3x12x4xbf16, #tpu.memory_space<vmem>>, vector<1x12x4xbf16>
    %21 = vector.shape_cast %20 : vector<1x12x4xbf16> to vector<12x4xbf16>
    %cst_28 = arith.constant dense<0.000000e+00> : vector<56x4xf32>
    %22 = tpu.matmul %19, %21, %cst_28 {dimension_numbers = #tpu.dot_dimension_numbers<[1], [0], [0], [1], [0, 0, 1, 1], [], []>} : vector<56x12xbf16>, vector<12x4xbf16>, vector<56x4xf32> -> vector<56x4xf32>
    %23 = arith.addf %17, %22 : vector<56x4xf32>
    %c0_29 = arith.constant 0 : index
    %c0_30 = arith.constant 0 : index
    %24 = vector.load %arg7[%c0_29, %c0_30] : memref<64x4xf32, #tpu.memory_space<vmem>>, vector<56x4xf32>
    tpu.vector_store %arg7[%c0_29, %c0_30], %23 {strides = array<i32>} : memref<64x4xf32, #tpu.memory_space<vmem>>, vector<56x4xf32>,
    %c56 = arith.constant 56 : index
    %c0_31 = arith.constant 0 : index
    %25 = vector.load %arg7[%c56, %c0_31] : memref<64x4xf32, #tpu.memory_space<vmem>>, vector<8x4xf32>
    %c0_32 = arith.constant 0 : index
    %c0_33 = arith.constant 0 : index
    %c0_34 = arith.constant 0 : index
    %c0_35 = arith.constant 0 : index
    %26 = vector.load %arg3[%c0_32, %c0_33, %c0_34, %c0_35] : memref<1x2x8x12xbf16, #tpu.memory_space<vmem>>, vector<1x1x8x12xbf16>
    %27 = vector.shape_cast %26 : vector<1x1x8x12xbf16> to vector<8x12xbf16>
    %c2_36 = arith.constant 2 : index
    %c0_37 = arith.constant 0 : index
    %c0_38 = arith.constant 0 : index
    %28 = vector.load %arg4[%c2_36, %c0_37, %c0_38] : memref<3x12x4xbf16, #tpu.memory_space<vmem>>, vector<1x12x4xbf16>
    %29 = vector.shape_cast %28 : vector<1x12x4xbf16> to vector<12x4xbf16>
    %cst_39 = arith.constant dense<0.000000e+00> : vector<8x4xf32>
    %30 = tpu.matmul %27, %29, %cst_39 {dimension_numbers = #tpu.dot_dimension_numbers<[1], [0], [0], [1], [0, 0, 1, 1], [], []>} : vector<8x12xbf16>, vector<12x4xbf16>, vector<8x4xf32> -> vector<8x4xf32>
    %31 = arith.addf %25, %30 : vector<8x4xf32>
    %c56_40 = arith.constant 56 : index
    %c0_41 = arith.constant 0 : index
    %32 = vector.load %arg7[%c56_40, %c0_41] : memref<64x4xf32, #tpu.memory_space<vmem>>, vector<8x4xf32>
    tpu.vector_store %arg7[%c56_40, %c0_41], %31 {strides = array<i32>} : memref<64x4xf32, #tpu.memory_space<vmem>>, vector<8x4xf32>,
    %c0_42 = arith.constant 0 : index
    %c0_43 = arith.constant 0 : index
    %33 = vector.load %arg7[%c0_42, %c0_43] : memref<64x4xf32, #tpu.memory_space<vmem>>, vector<64x4xf32>
    %34 = tpu.transpose %33, [1, 0] : vector<64x4xf32> -> vector<4x64xf32>
    %c0_44 = arith.constant 0 : index
    %c0_45 = arith.constant 0 : index
    %c0_46 = arith.constant 0 : index
    %35 = vector.load %arg6[%c0_44, %c0_45, %c0_46] : memref<1x4x64xf32, #tpu.memory_space<vmem>>, vector<1x4x64xf32>
    %36 = vector.shape_cast %35 : vector<1x4x64xf32> to vector<4x64xf32>
    %37 = vector.shape_cast %34 : vector<4x64xf32> to vector<1x4x64xf32>
    tpu.vector_store %arg6[%c0_44, %c0_45, %c0_46], %37 {strides = array<i32>} : memref<1x4x64xf32, #tpu.memory_space<vmem>>, vector<1x4x64xf32>,
    return
  }
  func.func @transform_0(%arg0: i32, %arg1: i32) -> (i32, i32, i32, i32) {
    %c0_i32 = arith.constant 0 : i32
    %c0_i32_0 = arith.constant 0 : i32
    %c0_i32_1 = arith.constant 0 : i32
    return %arg0, %c0_i32, %arg1, %c0_i32_0 : i32, i32, i32, i32
  }
  func.func @transform_1(%arg0: i32, %arg1: i32) -> (i32, i32, i32, i32) {
    %c1_i32 = arith.constant 1 : i32
    %0 = arith.addi %arg1, %c1_i32 : i32
    %c8_i32 = arith.constant 8 : i32
    %1 = arith.muli %0, %c8_i32 : i32
    %c0_i32 = arith.constant 0 : i32
    %c0_i32_0 = arith.constant 0 : i32
    %c0_i32_1 = arith.constant 0 : i32
    return %arg0, %c0_i32, %1, %c0_i32_0 : i32, i32, i32, i32
  }
  func.func @transform_2(%arg0: i32, %arg1: i32) -> (i32, i32, i32) {
    %c0_i32 = arith.constant 0 : i32
    %c0_i32_0 = arith.constant 0 : i32
    %c0_i32_1 = arith.constant 0 : i32
    %c0_i32_2 = arith.constant 0 : i32
    return %c0_i32, %c0_i32_0, %c0_i32_1 : i32, i32, i32
  }
  func.func @transform_3(%arg0: i32, %arg1: i32) -> (i32, i32) {
    %c0_i32 = arith.constant 0 : i32
    %c0_i32_0 = arith.constant 0 : i32
    %c0_i32_1 = arith.constant 0 : i32
    return %c0_i32, %c0_i32_0 : i32, i32
  }
  func.func @transform_4(%arg0: i32, %arg1: i32) -> (i32, i32, i32) {
    %c0_i32 = arith.constant 0 : i32
    %c0_i32_0 = arith.constant 0 : i32
    return %arg0, %c0_i32, %arg1 : i32, i32, i32
  }
}

</mosaic_0001>

<bundles_post_ra>
// kernel: downsample_conv.1
= control target key start
LH: loop header
LB: loop body
LE: loop exit
PB: predicated region body
PF: predicated region fallthrough
CT: control target
= control target key end

     0   :  { %s1335_s15 = smov 0   ;;  %s1337_s16 = smov 0   ;;  %s1550_s0 = inlined_call_operand.vmem [shape: bf16[2,2,72,12], index: 0, kind: input, shape index: {}, may-alias: {0,1}]   ;;  %s1551_s1 = inlined_call_operand.vmem [shape: bf16[2,2,72,12], index: 1, kind: input, shape index: {}, may-alias: {0,1}]   ;;  %s1552_s2 = inlined_call_operand.vmem [shape: bf16[3,12,4], index: 2, kind: input, shape index: {}]   ;;  %s1553_s3 = inlined_call_operand.vmem [shape: f32[1,4], index: 3, kind: input, shape index: {}]   ;;  %s1554_s4 = inlined_call_operand.vmem [shape: f32[2,4,64], index: 4, kind: output, shape index: {}]  }
   0x1   :  { %s1339_s17 = smov 0   ;;  %s1341_s18 = smov 0  }
   0x2   :  { %s1343_s19 = smov 0  }
   0x3 LB: > { %s26_s20 = sadd.s32 1, %s1300_s18  ;;  %p42_p1 = scmp.ne.s32.totalorder %s1292_s16, %s1288_s15  ;;  %s1304_s19 = sphi %s1343_s19, %s14_s19   ;;  %s1300_s18 = sphi %s1341_s18, %s1559_s18   ;;  %s1296_s17 = sphi %s1339_s17, %s1558_s17   ;;  %s1292_s16 = sphi %s1337_s16, %s1557_s16   ;;  %s1288_s15 = sphi %s1335_s15, %s1556_s15  }
   0x4   : > { %p28_p0 = scmp.ge.s32.totalorder %s26_s20, 2  ;;  %p43_p2 = scmp.eq.s32.totalorder %s1304_s19, 0 }
   0x5   : > { %s35_s23 = sadd.s32 1, %s1292_s16  ;;  %p1052_p5 = scmp.ge.s32.totalorder %s1304_s19, 2 }
   0x6   : > { %s1561_s20 = smov (%p28_p0, %s26_s20), 0  ;;  %p1366_p3 = por %p43_p2, %p42_p1 }
   0x7   : > { %s30_s22 = ssub.s32 %s1300_s18, %s1561_s20  ;;  %176 = sbr.rel (%p1052_p5) target bundleno = 41 (0x29), region = 24 }
   0x8   : > { %p33_p4 = scmp.eq.s32.totalorder %s30_s22, 0 }
   0xa   : > { %s1374_s24 = scalar_select %p33_p4, %s1292_s16, %s35_s23  }
   0xc   : > { %179 = sbr.rel (!%p1366_p3) target bundleno = 34 (0x22), region = 28  ;;  %s181_s25 = sand.u32 (%p1366_p3), 1, %s1292_s16  }
   0xd   : > { %s1175_s26 = smul.u32 (%p1366_p3), 72, %s1300_s18  ;;  %s1053_s27 = sshll.u32 (%p1366_p3), %s181_s25, 6 }
   0xe   : > { %s1386_s5 = scalar_lea.vmem (%p1366_p3), [#allocation3], %s1053_s27   ;;  %s1388_s6 = smov (%p1366_p3), 0  }
   0xf   : > { %s1384_s30 = scalar_lea.vmem (%p1366_p3), %s1550_s0, %s1175_s26  }
  0x11 LB: >> { %v213_v0 = vld [vmem:[%s1384_s30] sm:$0xf]  ;;  %v215_v1 = vld [vmem:[%s1384_s30 + $0x4] sm:$0xf]  ;;  %v217_v2 = vld [vmem:[%s1384_s30 + $0x8] sm:$0xf]  ;;  %s1308_s6 = sphi %s1388_s6, %s207_s6  }
  0x12   : >> { %214 = vst [vmem:[%s1386_s5] sm:$0xf] %v213_v0  ;;  %v219_v3 = vld [vmem:[%s1384_s30 + $0xc] sm:$0xf]  ;;  %v221_v4 = vld [vmem:[%s1384_s30 + $0x10] sm:$0xf]  ;;  %s207_s6 = sadd.s32 1, %s1308_s6  }
  0x13   : >> { %216 = vst [vmem:[%s1386_s5 + $0x4] sm:$0xf] %v215_v1  ;;  %v223_v5 = vld [vmem:[%s1384_s30 + $0x14] sm:$0xf]  ;;  %v225_v6 = vld [vmem:[%s1384_s30 + $0x18] sm:$0xf] }
  0x14   : >> { %218 = vst [vmem:[%s1386_s5 + $0x8] sm:$0xf] %v217_v2  ;;  %v227_v7 = vld [vmem:[%s1384_s30 + $0x1c] sm:$0xf]  ;;  %v229_v8 = vld [vmem:[%s1384_s30 + $0x24] sm:$0xf] }
  0x15   : >> { %220 = vst [vmem:[%s1386_s5 + $0xc] sm:$0xf] %v219_v3  ;;  %v231_v9 = vld [vmem:[%s1384_s30 + $0x28] sm:$0xf]  ;;  %v233_v10 = vld [vmem:[%s1384_s30 + $0x2c] sm:$0xf] }
  0x16   : >> { %222 = vst [vmem:[%s1386_s5 + $0x10] sm:$0xf] %v221_v4  ;;  %v235_v11 = vld [vmem:[%s1384_s30 + $0x30] sm:$0xf]  ;;  %v237_v12 = vld [vmem:[%s1384_s30 + $0x34] sm:$0xf] }
  0x17   : >> { %224 = vst [vmem:[%s1386_s5 + $0x14] sm:$0xf] %v223_v5  ;;  %v239_v13 = vld [vmem:[%s1384_s30 + $0x38] sm:$0xf]  ;;  %v241_v14 = vld [vmem:[%s1384_s30 + $0x3c] sm:$0xf] }
  0x18   : >> { %226 = vst [vmem:[%s1386_s5 + $0x18] sm:$0xf] %v225_v6  ;;  %v243_v15 = vld [vmem:[%s1384_s30 + $0x40] sm:$0xf]  ;;  %p206_p6 = scmp.ge.s32.totalorder %s207_s6, 1 }
  0x19   : >> { %228 = vst [vmem:[%s1386_s5 + $0x1c] sm:$0xf] %v227_v7 }
  0x1a   : >> { %230 = vst [vmem:[%s1386_s5 + $0x20] sm:$0xf] %v229_v8 }
  0x1b   : >> { %232 = vst [vmem:[%s1386_s5 + $0x24] sm:$0xf] %v231_v9 }
  0x1c   : >> { %234 = vst [vmem:[%s1386_s5 + $0x28] sm:$0xf] %v233_v10 }
  0x1d   : >> { %236 = vst [vmem:[%s1386_s5 + $0x2c] sm:$0xf] %v235_v11  ;;  %209 = sbr.rel (!%p206_p6) target bundleno = 17 (0x11), region = 199 }
  0x1e   : >> { %238 = vst [vmem:[%s1386_s5 + $0x30] sm:$0xf] %v237_v12 }
  0x1f   : >> { %240 = vst [vmem:[%s1386_s5 + $0x34] sm:$0xf] %v239_v13 }
  0x20   : >> { %242 = vst [vmem:[%s1386_s5 + $0x38] sm:$0xf] %v241_v14 }
  0x21   : >> { %244 = vst [vmem:[%s1386_s5 + $0x3c] sm:$0xf] %v243_v15 }
  0x22 PF: > { %402 = sbr.rel (!%p1366_p3) target bundleno = 41 (0x29), region = 90  ;;  %s404_s7 = sand.u32 (%p1366_p3), 1, %s1292_s16  }
  0x23   : > { %s1064_s8 = smul.u32 (%p1366_p3), 72, %s1300_s18  ;;  %s1063_s9 = sshll.u32 (%p1366_p3), %s404_s7, 3 }
  0x24   : > { %s406_s13 = scalar_lea.vmem (%p1366_p3), [#allocation4], %s1063_s9 }
  0x25   : > { %s961_s12 = scalar_lea.vmem (%p1366_p3), %s1551_s1, %s1064_s8 }
  0x26   : > { %v1065_v16 = vld [vmem:[%s961_s12 + $0x20] sm:$0xf] (%p1366_p3)  ;;  %v1066_v17 = vld [vmem:[%s961_s12 + $0x44] sm:$0xf] (%p1366_p3) }
  0x27   : > { %430 = vst [vmem:[%s406_s13] sm:$0xf] %v1065_v16 }
  0x28   : > { %432 = vst [vmem:[%s406_s13 + $0x4] sm:$0xf] %v1066_v17 }
  0x29 PF: > { %p1067_p7 = scmp.ge.s32.totalorder %s1304_s19, 1  ;;  %p459_p8 = scmp.lt.s32.totalorder %s1304_s19, 3 }
  0x2b   : > { %p460_p9 = pnand %p1067_p7, %p459_p8 }
  0x2c   : > { %s466_s25 = sand.u32 (!%p460_p9), 1, %s1288_s15   ;;  %p511_p10 = scmp.lt.s32.totalorder (!%p460_p9), %s1296_s17, 1 }
  0x2d   : > { %463 = sbr.rel (%p460_p9) target bundleno = 379 (0x17b), region = 131  ;;  %s1068_s30 = sshll.u32 (!%p460_p9), %s466_s25, 6 }
  0x2e   : > { %s1457_s15 = scalar_lea.vmem (!%p460_p9), [#allocation3], %s1068_s30  ;;  %s1069_s9 = sshll.u32 (!%p460_p9), %s466_s25, 3 }
  0x2f   : > { %s475_s14 = scalar_lea.vmem (!%p460_p9), [#allocation4], %s1069_s9 }
  0x32   : > { %v1089_v18 = vld [vmem:[%s1552_s2] sm:$0xf]  ;;  %v1164_v19 = vld [vmem:[%s1552_s2] sm:$0x30]  ;;  %vm571_vm0 = vcmask 1045504   ;;  %vm558_vm1 = vcmask 97280  }
  0x33   : > { %v1090_v20 = vor.u32 %v1164_v19, %v1089_v18  ;;  %v1123_v21 = vld [vmem:[%s1552_s2 + $0x8] sm:$0xf]  ;;  %v1169_v22 = vld [vmem:[%s1552_s2 + $0x8] sm:$0x30]  ;;  %v1145_v24 = vld [vmem:[%s1552_s2 + $0x10] sm:$0xf] }
  0x34   : > { %v1124_v23 = vor.u32 %v1169_v22, %v1123_v21  ;;  %v1173_v25 = vld [vmem:[%s1552_s2 + $0x10] sm:$0x30]  ;;  %v1160_v27 = vld [vmem:[%s1457_s15] sm:$0xff]  ;;  %v1161_v33 = vld [vmem:[%s1457_s15 + $0x8] sm:$0xff]  ;;  %vm604_vm2 = vcmask 31744   ;;  %s1563_s17 = smov (!%p511_p10, %s1296_s17), 1 }
  0x35   : > { %v573_v26 = vsel %vm571_vm0, %v1090_v20, 0  ;;  %v1146_v28 = vor.u32 %v1173_v25, %v1145_v24  ;;  %v1165_v30 = vld [vmem:[%s1457_s15 + $0x20] sm:$0xff]  ;;  %v1166_v34 = vld [vmem:[%s1457_s15 + $0x28] sm:$0xff]  ;;  %v1155_v36 = vld [vmem:[%s1552_s2 + $0x10] sm:$0xf]  ;;  %s1070_s23 = sshll.u32 %s1563_s17, 2 }
  0x36   : > { %582 = vmatpush.bf16.msra.mxu0 %v573_v26  ;;  %v671_v29 = vsel %vm571_vm0, %v1124_v23, 0  ;;  %v1170_v32 = vld [vmem:[%s1457_s15 + $0x4] sm:$0xff]  ;;  %v1171_v35 = vld [vmem:[%s1457_s15 + $0xc] sm:$0xff]  ;;  %v1174_v37 = vld [vmem:[%s1552_s2 + $0x10] sm:$0x30]  ;;  %s517_s27 = scalar_lea.vmem %s1554_s4, %s1070_s23  ;;  %vm885_vm3 = vcmask 519168  }
  0x37   : > { %680 = vmatpush.bf16.msra.mxu1 %v671_v29  ;;  %v771_v31 = vsel %vm571_vm0, %v1146_v28, 0  ;;  %v1156_v38 = vor.u32 %v1174_v37, %v1155_v36  ;;  %v816_v40 = vld [vmem:[%s475_s14] sm:$0xf]  ;;  %v1162_v41 = vld [vmem:[%s1457_s15 + $0x10] sm:$0xff]  ;;  %v731_v44 = vld [vmem:[%s1457_s15 + $0x1c] sm:$0xf] }
  0x38   : > { %780 = vmatpush.bf16.msra.mxu2 %v771_v31  ;;  %v1167_v42 = vld [vmem:[%s1457_s15 + $0x30] sm:$0xff]  ;;  %v748_v45 = vunpack.c.l.b16 %v731_v44  ;;  %v1163_v46 = vld [vmem:[%s1457_s15 + $0x18] sm:$0xff]  ;;  %v1496_v49 = vld [vmem:[%s1553_s3] ss:$0 sm:$0xff] }
  0x39   : > { %1091 = vmatmul.msk.bf16.vlgmr.msra.gmra.mxu0 %vm558_vm1, %v1160_v27  ;;  %v828_v39 = vsel %vm571_vm0, %v1156_v38, 0  ;;  %v1172_v43 = vld [vmem:[%s1457_s15 + $0x14] sm:$0xff] }
  0x3a   : > { %1125 = vmatmul.msk.bf16.vlgmr.msra.gmra.mxu1 %vm558_vm1, %v1165_v30  ;;  %837 = vmatpush.bf16.msra.mxu3 %v828_v39  ;;  %v1168_v47 = vld [vmem:[%s1457_s15 + $0x38] sm:$0xff]  ;;  %v752_v48 = vpack.c.b16 %v748_v45, %v748_v45 }
  0x3b   : > { %1147 = vmatmul.msk.bf16.vlgmr.msra.gmra.mxu2 %vm558_vm1, %v1170_v32 }
  0x3d   : > { %1157 = vmatmul.msk.bf16.vlgmr.msra.gmra.mxu3 %vm558_vm1, %v816_v40 }
  0x49   : > { %1092 = vmatmul.msk.bf16.gmra.mxu0 %vm558_vm1, %v1161_v33 }
  0x4a   : > { %1126 = vmatmul.msk.bf16.gmra.mxu1 %vm558_vm1, %v1166_v34 }
  0x4b   : > { %1148 = vmatmul.msk.bf16.gmra.mxu2 %vm558_vm1, %v1171_v35 }
  0x59   : > { %1093 = vmatmul.msk.bf16.gmra.mxu0 %vm558_vm1, %v1162_v41 }
  0x5a   : > { %1127 = vmatmul.msk.bf16.gmra.mxu1 %vm558_vm1, %v1167_v42 }
  0x5b   : > { %1149 = vmatmul.msk.bf16.gmra.mxu2 %vm558_vm1, %v1172_v43 }
  0x69   : > { %1094 = vmatmul.msk.bf16.gmra.mxu0 %vm558_vm1, %v1163_v46 }
  0x6a   : > { %1128 = vmatmul.msk.bf16.gmra.mxu1 %vm558_vm1, %v1168_v47 }
  0x6b   : > { %1150 = vmatmul.msk.bf16.gmra.mxu2 %vm558_vm1, %v752_v48 }
  0xb6   : > { %v584_v50 = vpop.f32.mrf.mxu0 }
  0xb7   : > { %v585_v51 = vadd.f32 %v1496_v49, %v584_v50  ;;  %v682_v52 = vpop.f32.mrf.mxu1 }
  0xb9   : > { %605 = vst.msk [vmem:[#allocation2] sm:$0xff] %vm604_vm2, %v585_v51 }
  0xbe   : > { %v586_v53 = vpop.f32.mrf.mxu0  ;;  %v782_v54 = vpop.f32.mrf.mxu2 }
  0xbf   : > { %v587_v55 = vadd.f32 %v1496_v49, %v586_v53  ;;  %v684_v56 = vpop.f32.mrf.mxu1 }
  0xc0   : > { %v613_v57 = vld [vmem:[#allocation2] sm:$0xff]  ;;  %v839_v19 = vpop.f32.mrf.mxu3 }
  0xc1   : > { %v702_v58 = vadd.f32 %v682_v52, %v613_v57  ;;  %606 = vst.msk [vmem:[#allocation2 + $0x8] sm:$0xff] %vm604_vm2, %v587_v55 }
  0xc3   : > { %710 = vst.msk [vmem:[#allocation2] sm:$0xff] %vm604_vm2, %v702_v58 }
  0xc6   : > { %v589_v59 = vpop.f32.mrf.mxu0  ;;  %v784_v60 = vpop.f32.mrf.mxu2 }
  0xc7   : > { %v590_v61 = vadd.f32 %v1496_v49, %v589_v59  ;;  %v687_v62 = vpop.f32.mrf.mxu1 }
  0xc8   : > { %v614_v63 = vld [vmem:[#allocation2 + $0x8] sm:$0xff]  ;;  %v841_v28 = vpop.f32.mrf.mxu3 }
  0xc9   : > { %v703_v0 = vadd.f32 %v684_v56, %v614_v63  ;;  %607 = vst.msk [vmem:[#allocation2 + $0x10] sm:$0xff] %vm604_vm2, %v590_v61 }
  0xca   : > { %v718_v1 = vld [vmem:[#allocation2] sm:$0xff] }
  0xcb   : > { %711 = vst.msk [vmem:[#allocation2 + $0x8] sm:$0xff] %vm604_vm2, %v703_v0  ;;  %v801_v2 = vadd.f32 %v782_v54, %v718_v1 }
  0xcd   : > { %808 = vst.msk [vmem:[#allocation2] sm:$0xff] %vm604_vm2, %v801_v2 }
  0xce   : > { %v591_v3 = vpop.f32.mrf.mxu0  ;;  %v787_v4 = vpop.f32.mrf.mxu2 }
  0xcf   : > { %v592_v5 = vadd.f32 %v1496_v49, %v591_v3  ;;  %v689_v6 = vpop.f32.mrf.mxu1 }
  0xd0   : > { %v615_v7 = vld [vmem:[#allocation2 + $0x10] sm:$0xff] }
  0xd1   : > { %v704_v8 = vadd.f32 %v687_v62, %v615_v7  ;;  %608 = vst.msk [vmem:[#allocation2 + $0x18] sm:$0xff] %vm604_vm2, %v592_v5 }
  0xd2   : > { %v719_v9 = vld [vmem:[#allocation2 + $0x8] sm:$0xff] }
  0xd3   : > { %712 = vst.msk [vmem:[#allocation2 + $0x10] sm:$0xff] %vm604_vm2, %v704_v8  ;;  %v802_v10 = vadd.f32 %v784_v60, %v719_v9 }
  0xd4   : > { %v845_v11 = vld [vmem:[#allocation2] sm:$0xff] }
  0xd5   : > { %809 = vst.msk [vmem:[#allocation2 + $0x8] sm:$0xff] %vm604_vm2, %v802_v10  ;;  %853 = vxpose.xlu0.b32.start [1/8] (short) (narrow) %v845_v11, 8 }
  0xd6   : > { %v594_v12 = vpop.f32.mrf.mxu0  ;;  %v789_v13 = vpop.f32.mrf.mxu2 }
  0xd7   : > { %v595_v14 = vadd.f32 %v1496_v49, %v594_v12  ;;  %v692_v17 = vpop.f32.mrf.mxu1 }
  0xd8   : > { %v616_v15 = vld [vmem:[#allocation2 + $0x18] sm:$0xff] }
  0xd9   : > { %v705_v16 = vadd.f32 %v689_v6, %v616_v15  ;;  %609 = vst.msk [vmem:[#allocation2 + $0x20] sm:$0xff] %vm604_vm2, %v595_v14 }
  0xda   : > { %v720_v18 = vld [vmem:[#allocation2 + $0x10] sm:$0xff] }
  0xdb   : > { %713 = vst.msk [vmem:[#allocation2 + $0x18] sm:$0xff] %vm604_vm2, %v705_v16  ;;  %v803_v20 = vadd.f32 %v787_v4, %v720_v18 }
  0xdc   : > { %v846_v21 = vld [vmem:[#allocation2 + $0x8] sm:$0xff] }
  0xdd   : > { %810 = vst.msk [vmem:[#allocation2 + $0x10] sm:$0xff] %vm604_vm2, %v803_v20  ;;  %854 = vxpose.xlu0.b32.cont [2/8] (short) (narrow) %v846_v21, 8 }
  0xde   : > { %v596_v22 = vpop.f32.mrf.mxu0  ;;  %v792_v23 = vpop.f32.mrf.mxu2 }
  0xdf   : > { %v597_v24 = vadd.f32 %v1496_v49, %v596_v22  ;;  %v694_v30 = vpop.f32.mrf.mxu1 }
  0xe0   : > { %v617_v25 = vld [vmem:[#allocation2 + $0x20] sm:$0xff] }
  0xe1   : > { %v706_v26 = vadd.f32 %v692_v17, %v617_v25  ;;  %610 = vst.msk [vmem:[#allocation2 + $0x28] sm:$0xff] %vm604_vm2, %v597_v24 }
  0xe2   : > { %v721_v27 = vld [vmem:[#allocation2 + $0x18] sm:$0xff] }
  0xe3   : > { %714 = vst.msk [vmem:[#allocation2 + $0x20] sm:$0xff] %vm604_vm2, %v706_v26  ;;  %v804_v29 = vadd.f32 %v789_v13, %v721_v27 }
  0xe4   : > { %v847_v31 = vld [vmem:[#allocation2 + $0x10] sm:$0xff] }
  0xe5   : > { %811 = vst.msk [vmem:[#allocation2 + $0x18] sm:$0xff] %vm604_vm2, %v804_v29  ;;  %855 = vxpose.xlu0.b32.cont [3/8] (short) (narrow) %v847_v31, 8 }
  0xe6   : > { %v599_v32 = vpop.f32.mrf.mxu0  ;;  %v794_v33 = vpop.f32.mrf.mxu2 }
  0xe7   : > { %v600_v34 = vadd.f32 %v1496_v49, %v599_v32  ;;  %v697_v40 = vpop.f32.mrf.mxu1 }
  0xe8   : > { %v618_v35 = vld [vmem:[#allocation2 + $0x28] sm:$0xff] }
  0xe9   : > { %v707_v36 = vadd.f32 %v694_v30, %v618_v35  ;;  %611 = vst.msk [vmem:[#allocation2 + $0x30] sm:$0xff] %vm604_vm2, %v600_v34 }
  0xea   : > { %v722_v37 = vld [vmem:[#allocation2 + $0x20] sm:$0xff] }
  0xeb   : > { %715 = vst.msk [vmem:[#allocation2 + $0x28] sm:$0xff] %vm604_vm2, %v707_v36  ;;  %v805_v38 = vadd.f32 %v792_v23, %v722_v37 }
  0xec   : > { %v848_v39 = vld [vmem:[#allocation2 + $0x18] sm:$0xff] }
  0xed   : > { %812 = vst.msk [vmem:[#allocation2 + $0x20] sm:$0xff] %vm604_vm2, %v805_v38  ;;  %856 = vxpose.xlu0.b32.cont [4/8] (short) (narrow) %v848_v39, 8 }
  0xee   : > { %v601_v41 = vpop.f32.mrf.mxu0  ;;  %v797_v42 = vpop.f32.mrf.mxu2 }
  0xef   : > { %v602_v43 = vadd.f32 %v1496_v49, %v601_v41  ;;  %v699_v52 = vpop.f32.mrf.mxu1 }
  0xf0   : > { %v619_v44 = vld [vmem:[#allocation2 + $0x30] sm:$0xff] }
  0xf1   : > { %v708_v45 = vadd.f32 %v697_v40, %v619_v44  ;;  %612 = vst.msk [vmem:[#allocation2 + $0x38] sm:$0xff] %vm604_vm2, %v602_v43 }
  0xf2   : > { %v723_v46 = vld [vmem:[#allocation2 + $0x28] sm:$0xff] }
  0xf3   : > { %716 = vst.msk [vmem:[#allocation2 + $0x30] sm:$0xff] %vm604_vm2, %v708_v45  ;;  %v806_v47 = vadd.f32 %v794_v33, %v723_v46 }
  0xf4   : > { %v849_v48 = vld [vmem:[#allocation2 + $0x20] sm:$0xff] }
  0xf5   : > { %813 = vst.msk [vmem:[#allocation2 + $0x28] sm:$0xff] %vm604_vm2, %v806_v47  ;;  %857 = vxpose.xlu0.b32.cont [5/8] (short) (narrow) %v849_v48, 8 }
  0xf6   : > { %v799_v50 = vpop.f32.mrf.mxu2 }
  0xf8   : > { %v620_v51 = vld [vmem:[#allocation2 + $0x38] sm:$0xff] }
  0xf9   : > { %v709_v53 = vadd.f32 %v699_v52, %v620_v51 }
  0xfa   : > { %v724_v54 = vld [vmem:[#allocation2 + $0x30] sm:$0xff] }
  0xfb   : > { %717 = vst.msk [vmem:[#allocation2 + $0x38] sm:$0xff] %vm604_vm2, %v709_v53  ;;  %v807_v49 = vadd.f32 %v797_v42, %v724_v54 }
  0xfc   : > { %v850_v55 = vld [vmem:[#allocation2 + $0x28] sm:$0xff] }
  0xfd   : > { %814 = vst.msk [vmem:[#allocation2 + $0x30] sm:$0xff] %vm604_vm2, %v807_v49  ;;  %858 = vxpose.xlu0.b32.cont [6/8] (short) (narrow) %v850_v55, 8 }
 0x102   : > { %v815_v56 = vld [vmem:[#allocation2 + $0x38] sm:$0xff] }
 0x103   : > { %v843_v57 = vadd.f32 %v839_v19, %v815_v56 }
 0x104   : > { %v851_v58 = vld [vmem:[#allocation2 + $0x30] sm:$0xff] }
 0x105   : > { %844 = vst.msk [vmem:[#allocation2 + $0x38] sm:$0xff] %vm604_vm2, %v843_v57  ;;  %859 = vxpose.xlu0.b32.cont [7/8] (short) (narrow) %v851_v58, 8 }
 0x10c   : > { %v852_v59 = vld [vmem:[#allocation2 + $0x38] sm:$0xff] }
 0x10d   : > { %860 = vxpose.xlu0.b32.end [8/8] (short) (narrow) %v852_v59, 8 }
 0x179   : > { %v869_v60 = vpop.trf.xlu0 }
 0x17a   : > { %886 = vst.msk [vmem:[%s517_s27] sm:$0xf] %vm885_vm3, %v869_v60 }
 0x17b PF: > { %s14_s19 = sadd.s32 1, %s1304_s19   ;;  %s1556_s15 = smov %s1292_s16 }
 0x17c   : > { %p11_p11 = scmp.ge.s32.totalorder %s14_s19, 4   ;;  %s1557_s16 = smov %s1374_s24 }
 0x17d   : > { %s1558_s17 = smov %s1300_s18  ;;  %s1559_s18 = smov %s1561_s20 }
 0x17e   :  { %13 = sbr.rel (!%p11_p11) target bundleno = 3 (0x3), region = 221 }

</bundles_post_ra>
